<compile_context>
chip_gen: v6e
topology: v6e:2x2x1
jax: 0.10.0
libtpu: 0.0.40
codegen_flags: <defaults>
</compile_context>

<pallas_src>
import math

import jax
import jax.numpy as jnp
from jax.experimental import pallas as pl
from jax.experimental.pallas import tpu as pltpu


def _round_up(x, m):
    return ((x + m - 1) // m) * m


def _attention_kernel(x_ref, w_ref, b_ref, wf_ref, aw_ref):
    # x_ref : (TILE, D) feature tile (VMEM), native input dtype
    # w_ref : (D, 1)    pre-transposed nn.Linear(D, 1) weight (VMEM, loop-invariant)
    # b_ref : (1,)      bias scalar (SMEM, loop-invariant)
    x = x_ref[...]
    # Per-row dot with the weight column on the MXU; accumulate in f32.
    logits = jnp.dot(x, w_ref[...], preferred_element_type=jnp.float32) + b_ref[0]
    a = jax.nn.sigmoid(logits)                      # (TILE, 1) f32
    # TODO(synk): for bf16 inputs PyTorch broadcast-multiplies in f32; gating
    # in the input dtype is within bf16 noise and halves vreg/VMEM pressure.
    wf_ref[...] = x * a.astype(x.dtype)
    aw_ref[...] = a.astype(aw_ref.dtype)


def _vmem_limit_bytes():
    # Physical VMEM per TensorCore: 128 MiB on v5e/v6e, 64 MiB on v7x.
    cap = 64 * 1024 * 1024  # most restrictive assumption (v7x) as fallback
    try:
        info = pltpu.get_tpu_info()
        cap = int(getattr(info, "vmem_capacity_bytes", cap))
    except Exception:
        pass
    # Leave headroom for compiler scratch; never exceed 64 MiB even on 128 MiB chips.
    return max(32 * 1024 * 1024, min((cap * 3) // 4, 64 * 1024 * 1024))


def attention_forward(features, weight, bias, *, tile_rows=None,
                      target_input_bytes=4 * 1024 * 1024):
    """features: (..., D); weight: (1, D); bias: (1,). Returns (weighted, attn)."""
    *lead, D = features.shape
    N = math.prod(lead) if lead else 1
    itemsize = features.dtype.itemsize

    vmem_limit = _vmem_limit_bytes()
    block_budget = vmem_limit // 2   # conservative share for pipelined blocks + temps

    if tile_rows is None:
        # Accurate per-row VMEM footprint:
        #   input block + weighted output block (double-buffered, real dtype),
        #   (TILE,1) attn block lane-padded to 128 lanes (double-buffered),
        #   f32 logits/sigmoid temporaries, lane-padded to 128 lanes.
        bytes_per_row = (
            2 * D * itemsize        # x block, double-buffered
            + 2 * D * itemsize      # weighted-features block, double-buffered
            + 2 * 128 * itemsize    # attn (TILE,1) block, lane-padded, double-buffered
            + 3 * 128 * 4           # f32 intermediates, lane-padded
        )
        rows_from_budget = max(8, block_budget // bytes_per_row)
        rows_from_target = max(8, target_input_bytes // (D * itemsize))
        tile_rows = min(rows_from_budget, rows_from_target)
    tile_rows = max(8, (int(tile_rows) // 8) * 8)
    tile_rows = min(tile_rows, _round_up(N, 8))

    grid = (pl.cdiv(N, tile_rows),)   # ragged tail handled by the pipeline (no padding)

    x2d = features.reshape(N, D)      # row-major flatten: free, no copy
    w_col = weight.reshape(D, 1)      # (1, D) -> (D, 1): free, hoists the transpose

    wf, aw = pl.pallas_call(
        _attention_kernel,
        out_shape=(
            jax.ShapeDtypeStruct((N, D), features.dtype),
            jax.ShapeDtypeStruct((N, 1), features.dtype),
        ),
        grid=grid,
        in_specs=[
            pl.BlockSpec((tile_rows, D), lambda i: (i, 0)),
            pl.BlockSpec((D, 1), lambda i: (0, 0)),
            pl.BlockSpec(memory_space=pltpu.MemorySpace.SMEM),
        ],
        out_specs=(
            pl.BlockSpec((tile_rows, D), lambda i: (i, 0)),
            pl.BlockSpec((tile_rows, 1), lambda i: (i, 0)),
        ),
        compiler_params=pltpu.CompilerParams(
            dimension_semantics=("parallel",),
            vmem_limit_bytes=vmem_limit,
        ),
    )(x2d, w_col, bias)

    wf = wf.reshape(*lead, D)
    aw = aw.reshape(*lead, 1)
    return wf, aw


def _reference(features, weight, bias):
    a = jax.nn.sigmoid(features @ weight.T + bias)   # (..., 1)
    return features * a, a


if __name__ == "__main__":
    key = jax.random.PRNGKey(0)
    k_x, k_w, k_b, k_x2 = jax.random.split(key, 4)

    # Small demo shape consistent with the module: batch=2, seq=8, feature_dim=32.
    B, S, D = 2, 8, 32
    features = jax.random.normal(k_x, (B, S, D), dtype=jnp.float32)
    weight = jax.random.normal(k_w, (1, D), dtype=jnp.float32) * 0.1
    bias = jax.random.normal(k_b, (1,), dtype=jnp.float32) * 0.1

    weighted, attn_weights = attention_forward(features, weight, bias)
    jax.block_until_ready((weighted, attn_weights))

    ref_w, ref_a = _reference(features, weight, bias)
    assert jnp.allclose(attn_weights, ref_a, atol=1e-5, rtol=1e-5)
    assert jnp.allclose(weighted, ref_w, atol=1e-5, rtol=1e-5)

    # Ragged tail: N = 300 rows with a 64-row tile -> 5 grid steps, last one partial
    # (exercises the non-divisible grid path, no padding / slicing copies).
    B2, S2 = 3, 100
    features2 = jax.random.normal(k_x2, (B2, S2, D), dtype=jnp.float32)
    weighted2, attn2 = attention_forward(features2, weight, bias, tile_rows=64)
    jax.block_until_ready((weighted2, attn2))
    ref_w2, ref_a2 = _reference(features2, weight, bias)
    assert jnp.allclose(attn2, ref_a2, atol=1e-5, rtol=1e-5)
    assert jnp.allclose(weighted2, ref_w2, atol=1e-5, rtol=1e-5)

    print("KERNEL_OK")
</pallas_src>

<mosaic_0001>
module attributes {stable_mosaic.version = 11 : i64} {
  func.func @_attention_kernel(%arg0: i32, %arg1: memref<16x32xf32, #tpu.memory_space<vmem>>, %arg2: memref<32x1xf32, #tpu.memory_space<vmem>>, %arg3: memref<1xf32, #tpu.memory_space<smem>>, %arg4: memref<16x32xf32, #tpu.memory_space<vmem>>, %arg5: memref<16x1xf32, #tpu.memory_space<vmem>>) attributes {dimension_semantics = [#tpu.dimension_semantics<parallel>], iteration_bounds = array<i64: 1>, scalar_prefetch = 0 : i64, scratch_operands = 0 : i64, tpu.core_type = #tpu.core_type<tc>, window_params = [{transform_indices = @transform_0, window_bounds = array<i64: 16, 32>}, {pipeline_mode = #tpu.pipeline_mode<synchronous>, transform_indices = @transform_1, window_bounds = array<i64: 32, 1>}, {transform_indices = @transform_2, window_bounds = array<i64: 1>}, {transform_indices = @transform_3, window_bounds = array<i64: 16, 32>}, {transform_indices = @transform_4, window_bounds = array<i64: 16, 1>}]} {
    %c0 = arith.constant 0 : index
    %c0_0 = arith.constant 0 : index
    %0 = vector.load %arg1[%c0, %c0_0] : memref<16x32xf32, #tpu.memory_space<vmem>>, vector<16x32xf32>
    %c0_1 = arith.constant 0 : index
    %c0_2 = arith.constant 0 : index
    %1 = vector.load %arg2[%c0_1, %c0_2] : memref<32x1xf32, #tpu.memory_space<vmem>>, vector<32x1xf32>
    %cst = arith.constant dense<0.000000e+00> : vector<16x1xf32>
    %2 = tpu.matmul %0, %1, %cst {dimension_numbers = #tpu.dot_dimension_numbers<[1], [0], [0], [1], [0, 0, 1, 1], [], []>} : vector<16x32xf32>, vector<32x1xf32>, vector<16x1xf32> -> vector<16x1xf32>
    %c0_3 = arith.constant 0 : index
    %3 = memref.load %arg3[%c0_3] : memref<1xf32, #tpu.memory_space<smem>>
    %4 = vector.broadcast %3 : f32 to vector<16x1xf32>
    %5 = arith.addf %2, %4 : vector<16x1xf32>
    %6 = arith.negf %5 : vector<16x1xf32>
    %7 = math.exp %6 : vector<16x1xf32>
    %cst_4 = arith.constant 1.000000e+00 : f32
    %8 = vector.broadcast %cst_4 : f32 to vector<16x1xf32>
    %9 = arith.addf %8, %7 : vector<16x1xf32>
    %10 = arith.divf %8, %9 : vector<16x1xf32>
    %11 = vector.broadcast %10 : vector<16x1xf32> to vector<16x32xf32>
    %12 = arith.mulf %0, %11 : vector<16x32xf32>
    %c0_5 = arith.constant 0 : index
    %c0_6 = arith.constant 0 : index
    %13 = vector.load %arg4[%c0_5, %c0_6] : memref<16x32xf32, #tpu.memory_space<vmem>>, vector<16x32xf32>
    tpu.vector_store %arg4[%c0_5, %c0_6], %12 {strides = array<i32>} : memref<16x32xf32, #tpu.memory_space<vmem>>, vector<16x32xf32>,
    %c0_7 = arith.constant 0 : index
    %c0_8 = arith.constant 0 : index
    %14 = vector.load %arg5[%c0_7, %c0_8] : memref<16x1xf32, #tpu.memory_space<vmem>>, vector<16x1xf32>
    tpu.vector_store %arg5[%c0_7, %c0_8], %10 {strides = array<i32>} : memref<16x1xf32, #tpu.memory_space<vmem>>, vector<16x1xf32>,
    return
  }
  func.func @transform_0(%arg0: i32) -> (i32, i32) {
    %c0_i32 = arith.constant 0 : i32
    %c0_i32_0 = arith.constant 0 : i32
    return %arg0, %c0_i32 : i32, i32
  }
  func.func @transform_1(%arg0: i32) -> (i32, i32) {
    %c0_i32 = arith.constant 0 : i32
    %c0_i32_0 = arith.constant 0 : i32
    %c0_i32_1 = arith.constant 0 : i32
    return %c0_i32, %c0_i32_0 : i32, i32
  }
  func.func @transform_2(%arg0: i32) -> i32 {
    %c0_i32 = arith.constant 0 : i32
    %c0_i32_0 = arith.constant 0 : i32
    return %c0_i32 : i32
  }
  func.func @transform_3(%arg0: i32) -> (i32, i32) {
    %c0_i32 = arith.constant 0 : i32
    %c0_i32_0 = arith.constant 0 : i32
    return %arg0, %c0_i32 : i32, i32
  }
  func.func @transform_4(%arg0: i32) -> (i32, i32) {
    %c0_i32 = arith.constant 0 : i32
    %c0_i32_0 = arith.constant 0 : i32
    return %arg0, %c0_i32 : i32, i32
  }
}

</mosaic_0001>

<bundles_post_ra>
// kernel: tpu_custom_call.1
= control target key start
LH: loop header
LB: loop body
LE: loop exit
PB: predicated region body
PF: predicated region fallthrough
CT: control target
= control target key end

     0   :  { %vm26_vm0 = vcmask 261120   ;;  %s276_s0 = inlined_call_operand.vmem [shape: f32[16,32], index: 0, kind: input, shape index: {}]   ;;  %s277_s1 = inlined_call_operand.vmem [shape: f32[32,1], index: 1, kind: input, shape index: {}]   ;;  %s278_s2 = inlined_call_operand.<no memory space> [shape: f32[1], index: 2, kind: input, shape index: {}]   ;;  %s279_s3 = inlined_call_operand.hbm [shape: f32[16,32], index: 3, kind: output, shape index: {0}]   ;;  %s280_s4 = inlined_call_operand.vmem [shape: f32[16,1], index: 4, kind: output, shape index: {1}]  }
   0x1   :  { %v23_v0 = vld [vmem:[%s277_s1 + $0x18] sm:$0xff]  ;;  %v22_v1 = vld [vmem:[%s277_s1 + $0x10] sm:$0xff]  ;;  %v18_v2 = vld [vmem:[%s276_s0] sm:$0xff] }
   0x2   :  { %167 = vmatprep.subr.mxu0 %v23_v0  ;;  %v21_v3 = vld [vmem:[%s277_s1 + $0x8] sm:$0xff]  ;;  %175 = vmatprep.mubr.msk.f32.mxu0 %vm26_vm0, %v18_v2 }
   0x3   :  { %168 = vmatpush3.msra.mxu0 %v23_v0 }
   0x4   :  { %11 = vsyncpa [#allocation4], 0  ;;  %169 = vmatprep.subr.mxu0 %v22_v1  ;;  %v20_v4 = vld [vmem:[%s277_s1] sm:$0xff]  ;;  %v19_v5 = vld [vmem:[%s276_s0 + $0x8] sm:$0xff]  ;;  %v213_v6 = vmov 0   ;;  %v25_v7 = vstv %s278_s2  ;;  %vm134_vm1 = vcmask 7168  }
   0x5   :  { %170 = vmatpush3.msra.mxu0 %v22_v1  ;;  %182 = vset.pattern.permute.xlu0 %v213_v6  ;;  %s214_s30 = smov [#allocation3]  }
   0x6   :  { %171 = vmatprep.subr.mxu0 %v21_v3  ;;  %s142_s5 = sshll.u32 %s214_s30, 4  ;;  %s143_s5 = int_to_ptr.vmem [resolvable:$true] %s142_s5 }
   0x7   :  { %172 = vmatpush3.msra.mxu0 %v21_v3  ;;  %s191_s6 = scalar_lea.vmem %s143_s5, 256  ;;  %p196_p1 = scmp.lt.s32.totalorder %s143_s5, %s143_s5 }
   0x8   :  { %173 = vmatprep.subr.mxu0 %v20_v4  ;;  %p192_p0 = scmp.ne.s32.totalorder %s143_s5, %s191_s6  ;;  %p197_p2 = scmp.lt.s32.totalorder %s191_s6, %s191_s6 }
   0x9   :  { %174 = vmatpush3.msra.mxu0 %v20_v4 }
   0xa   :  { %176 = vmatmul.mubr.msk.f32.vlgmr.msra.gmra.mxu0 %vm26_vm0, %v19_v5  ;;  %p198_p3 = por %p197_p2, %p196_p1 }
   0xc   :  { %p199_p4 = pnand %p198_p3, %p192_p0 }
  0xca   :  { %v177_v8 = vpop.f32.mrf.mxu0 }
  0xcb   :  { %v105_v9 = vadd.f32 %v177_v8, %v25_v7 }
  0xcc   :  { %v99_v10 = vpop.f32.mrf.mxu0 }
  0xcd   :  { %v160_v11 = vmul.f32 -1.442695, %v105_v9  ;;  %v100_v12 = vadd.f32 %v99_v10, %v25_v7 }
  0xcf   :  { %183 = vpow2.f32 %v160_v11  ;;  %v159_v13 = vmul.f32 -1.442695, %v100_v12 }
  0xd1   :  { %185 = vpow2.f32 %v159_v13 }
  0xdc   :  { %v184_v14 = vpop.eup %183 }
  0xdd   :  { %v115_v15 = vadd.f32 1.0, %v184_v14 }
  0xde   :  { %v186_v16 = vpop.eup %185 }
  0xdf   :  { %187 = vrcp.f32 %v115_v15  ;;  %v114_v17 = vadd.f32 1.0, %v186_v16 }
  0xe1   :  { %189 = vrcp.f32 %v114_v17 }
  0xec   :  { %v188_v18 = vpop.eup %187 }
  0xed   :  { %136 = vst.msk [vmem:[%s280_s4 + $0x8] sm:$0xff] %vm134_vm1, %v188_v18 }
  0xee   :  { %v190_v19 = vpop.eup %189 }
  0xef   :  { %135 = vst.msk [vmem:[%s280_s4] sm:$0xff] %vm134_vm1, %v190_v19  ;;  %122 = vperm.xlu0 %182, %v190_v19  }
  0xf3   :  { %127 = vperm.xlu0 %182, %v188_v18  }
 0x16a   :  { %v123_v20 = vpop.permute.xlu0 %122 }
 0x16b   :  { %v130_v21 = vmul.f32 %v123_v20, %v18_v2 }
 0x16d   :  { %132 = vst.msk [vmem:[#allocation3] sm:$0xff] %vm26_vm0, %v130_v21 }
 0x16e   :  { %v128_v22 = vpop.permute.xlu0 %127 }
 0x16f   :  { %v131_v23 = vmul.f32 %v128_v22, %v19_v5 }
 0x171   :  { %133 = vst.msk [vmem:[#allocation3 + $0x8] sm:$0xff] %vm26_vm0, %v131_v23 }
 0x172   :  { %202 = shalt.err (!%p199_p4)
}
 0x173   :  { %s215_s4 = smov 128   ;;  %s216_s7 = smov 8  }
 0x174   :  { %148 = dma.vmem_to_hbm [thread:$0]  %s143_s5, 256, %s279_s3, [#allocation4], %s215_s4, %s215_s4, %s216_s7  }
 0x175   :  { %211 = dma.done.wait [#allocation4], 256  }
 0x176   :  { %212 = vsyncadd [#allocation4], 4294967040 }
 0x177   :  { %156 = vsyncpa [#allocation4], 1 }

</bundles_post_ra>
